<compile_context>
chip_gen: v7x
topology: tpu7x:2x2x1
jax: 0.10.0
libtpu: 0.0.40
codegen_flags: <defaults>
</compile_context>

<pallas_src>
import jax
import jax.numpy as jnp
from jax.experimental import pallas as pl
from jax.experimental.pallas import tpu as pltpu


def _round_up(n, m):
    return ((n + m - 1) // m) * m


def _triplet_kernel(alpha_ref, x1_ref, x2_ref, x3_ref,
                    w1_ref, b1_ref, w2_ref, b2_ref, c1_ref, c2_ref):
    """One grid step: embed TB rows of each branch, write fused concat outputs."""
    alpha = alpha_ref[0]          # scalar PReLU slope (SMEM, f32)
    w1 = w1_ref[...]              # [IN, HP]   bf16 (HP = 128, zero-padded)
    b1 = b1_ref[...]              # [1, HP]    f32
    w2 = w2_ref[...]              # [HP, OUT]  bf16 (padded rows are zero)
    b2 = b2_ref[...]              # [1, OUT]   f32

    tb = x1_ref.shape[0]

    # Fuse the three branches into a single MXU operand: cast each f32 block to
    # bf16 (VPU) and stack along the sublane axis -> one dot per layer, and
    # W1/W2 are pushed to the MXU once per grid step instead of three times.
    xb = jnp.concatenate(
        [x1_ref[...].astype(jnp.bfloat16),
         x2_ref[...].astype(jnp.bfloat16),
         x3_ref[...].astype(jnp.bfloat16)],
        axis=0)                                              # [3*TB, IN] bf16

    h = jnp.dot(xb, w1, preferred_element_type=jnp.float32) + b1   # [3*TB, HP]
    # PReLU as mul-by-select (single VPU select + mul, f32 throughout).
    h = h * jnp.where(h >= 0.0, jnp.float32(1.0), alpha)
    y = jnp.dot(h.astype(w2.dtype), w2,
                preferred_element_type=jnp.float32) + b2            # [3*TB, OUT]

    e1 = y[:tb]            # anchor
    e2 = y[tb:2 * tb]      # positive
    e3 = y[2 * tb:]        # negative

    # Fused concat epilogue: per-branch embeddings never round-trip HBM.
    c1_ref[...] = jnp.concatenate([e1, e2], axis=1).astype(c1_ref.dtype)
    c2_ref[...] = jnp.concatenate([e1, e3], axis=1).astype(c2_ref.dtype)


def triplet_net_v2_forward(x1, x2, x3, w1, b1, alpha, w2, b2,
                           *, max_batch_tile=512):
    B, IN = x1.shape
    HID = w1.shape[1]
    OUT = w2.shape[1]

    # Zero-pad hidden dim to a full 128-lane multiple (math is exact).
    HP = _round_up(max(HID, 128), 128)
    w1p = jnp.pad(w1, ((0, 0), (0, HP - HID))).astype(jnp.bfloat16)
    b1p = jnp.pad(jnp.reshape(b1, (1, HID)), ((0, 0), (0, HP - HID))).astype(jnp.float32)
    w2p = jnp.pad(w2, ((0, HP - HID), (0, 0))).astype(jnp.bfloat16)
    b2p = jnp.reshape(b2, (1, OUT)).astype(jnp.float32)
    alpha1 = jnp.reshape(alpha, (1,)).astype(jnp.float32)

    # Batch tiling: big tiles for HBM roofline, but at least 2 grid steps when
    # the batch allows it so v7x's two TensorCores both get work. No batch pad:
    # Pallas masks the ragged tail block.
    b8 = _round_up(B, 8)
    TB = min(_round_up(max_batch_tile, 8), b8)
    if b8 >= 16:
        TB = min(TB, _round_up((b8 + 1) // 2, 8))
    num_tiles = pl.cdiv(B, TB)

    c1, c2 = pl.pallas_call(
        _triplet_kernel,
        out_shape=(jax.ShapeDtypeStruct((B, 2 * OUT), jnp.float32),
                   jax.ShapeDtypeStruct((B, 2 * OUT), jnp.float32)),
        grid=(num_tiles,),
        in_specs=[
            # scalar PReLU slope lives in SMEM, same block every step
            pl.BlockSpec((1,), lambda i: (0,),
                         memory_space=pltpu.MemorySpace.SMEM),
            # the three branches: tile over batch, fed directly as f32
            pl.BlockSpec((TB, IN), lambda i: (i, 0)),
            pl.BlockSpec((TB, IN), lambda i: (i, 0)),
            pl.BlockSpec((TB, IN), lambda i: (i, 0)),
            # weights/biases: constant block index -> VMEM-resident across grid
            pl.BlockSpec((IN, HP), lambda i: (0, 0)),
            pl.BlockSpec((1, HP), lambda i: (0, 0)),
            pl.BlockSpec((HP, OUT), lambda i: (0, 0)),
            pl.BlockSpec((1, OUT), lambda i: (0, 0)),
        ],
        out_specs=(
            pl.BlockSpec((TB, 2 * OUT), lambda i: (i, 0)),
            pl.BlockSpec((TB, 2 * OUT), lambda i: (i, 0)),
        ),
        compiler_params=pltpu.CompilerParams(
            dimension_semantics=("parallel",),   # shard batch across TCs (v7x)
            vmem_limit_bytes=32 * 1024 * 1024,   # covers TB=512 on v5e too
        ),
    )(alpha1, x1, x2, x3, w1p, b1p, w2p, b2p)
    return c1, c2


def init_params(key, in_dim=300, hid_dim=100, out_dim=50, dtype=jnp.float32):
    # Deterministic init mimicking nn.Linear defaults (uniform +/- 1/sqrt(fan_in)).
    k1, k2, k3, k4 = jax.random.split(key, 4)
    bound1 = 1.0 / jnp.sqrt(in_dim)
    bound2 = 1.0 / jnp.sqrt(hid_dim)
    w1 = jax.random.uniform(k1, (in_dim, hid_dim), dtype, -bound1, bound1)
    b1 = jax.random.uniform(k2, (1, hid_dim), dtype, -bound1, bound1)
    w2 = jax.random.uniform(k3, (hid_dim, out_dim), dtype, -bound2, bound2)
    b2 = jax.random.uniform(k4, (1, out_dim), dtype, -bound2, bound2)
    alpha = jnp.array([0.25], dtype=dtype)  # nn.PReLU() default
    return w1, b1, alpha, w2, b2


def reference_forward(x1, x2, x3, w1, b1, alpha, w2, b2):
    # Pure-JAX reference with the same bf16-input / f32-accumulate quantization.
    f32 = jnp.float32
    w1b = w1.astype(jnp.bfloat16).astype(f32)
    w2b = w2.astype(jnp.bfloat16).astype(f32)

    def embed(x):
        xb = x.astype(jnp.bfloat16).astype(f32)
        h = xb @ w1b + b1
        h = jnp.where(h >= 0, h, alpha[0] * h)
        hb = h.astype(jnp.bfloat16).astype(f32)
        return hb @ w2b + b2

    e1, e2, e3 = embed(x1), embed(x2), embed(x3)
    return (jnp.concatenate([e1, e2], axis=1),
            jnp.concatenate([e1, e3], axis=1))


if __name__ == "__main__":
    key = jax.random.PRNGKey(0)
    kx1, kx2, kx3, kp = jax.random.split(key, 4)
    B, IN = 8, 300
    x1 = jax.random.normal(kx1, (B, IN), jnp.float32)
    x2 = jax.random.normal(kx2, (B, IN), jnp.float32)
    x3 = jax.random.normal(kx3, (B, IN), jnp.float32)
    w1, b1, alpha, w2, b2 = init_params(kp)

    fwd = jax.jit(triplet_net_v2_forward)
    c1, c2 = fwd(x1, x2, x3, w1, b1, alpha, w2, b2)
    c1, c2 = jax.block_until_ready((c1, c2))

    r1, r2 = reference_forward(x1, x2, x3, w1, b1, alpha, w2, b2)
    assert c1.shape == (B, 100) and c2.shape == (B, 100), (c1.shape, c2.shape)
    assert c1.dtype == jnp.float32 and c2.dtype == jnp.float32
    assert jnp.allclose(c1, r1, atol=2e-3, rtol=2e-3), "concat1 mismatch"
    assert jnp.allclose(c2, r2, atol=2e-3, rtol=2e-3), "concat2 mismatch"
    print("KERNEL_OK")
</pallas_src>

<mosaic_0001>
module attributes {stable_mosaic.version = 11 : i64} {
  func.func @_triplet_kernel(%arg0: i32, %arg1: memref<1xf32, #tpu.memory_space<smem>>, %arg2: memref<8x300xf32, #tpu.memory_space<vmem>>, %arg3: memref<8x300xf32, #tpu.memory_space<vmem>>, %arg4: memref<8x300xf32, #tpu.memory_space<vmem>>, %arg5: memref<300x128xbf16, #tpu.memory_space<vmem>>, %arg6: memref<1x128xf32, #tpu.memory_space<vmem>>, %arg7: memref<128x50xbf16, #tpu.memory_space<vmem>>, %arg8: memref<1x50xf32, #tpu.memory_space<vmem>>, %arg9: memref<8x100xf32, #tpu.memory_space<vmem>>, %arg10: memref<8x100xf32, #tpu.memory_space<vmem>>) attributes {dimension_semantics = [#tpu.dimension_semantics<parallel>], iteration_bounds = array<i64: 1>, scalar_prefetch = 0 : i64, scratch_operands = 0 : i64, tpu.core_type = #tpu.core_type<tc>, window_params = [{transform_indices = @transform_0, window_bounds = array<i64: 1>}, {transform_indices = @transform_1, window_bounds = array<i64: 8, 300>}, {transform_indices = @transform_2, window_bounds = array<i64: 8, 300>}, {transform_indices = @transform_3, window_bounds = array<i64: 8, 300>}, {pipeline_mode = #tpu.pipeline_mode<synchronous>, transform_indices = @transform_4, window_bounds = array<i64: 300, 128>}, {pipeline_mode = #tpu.pipeline_mode<synchronous>, transform_indices = @transform_5, window_bounds = array<i64: 1, 128>}, {pipeline_mode = #tpu.pipeline_mode<synchronous>, transform_indices = @transform_6, window_bounds = array<i64: 128, 50>}, {pipeline_mode = #tpu.pipeline_mode<synchronous>, transform_indices = @transform_7, window_bounds = array<i64: 1, 50>}, {transform_indices = @transform_8, window_bounds = array<i64: 8, 100>}, {transform_indices = @transform_9, window_bounds = array<i64: 8, 100>}]} {
    %c0 = arith.constant 0 : index
    %0 = memref.load %arg1[%c0] : memref<1xf32, #tpu.memory_space<smem>>
    %c0_0 = arith.constant 0 : index
    %c0_1 = arith.constant 0 : index
    %1 = vector.load %arg5[%c0_0, %c0_1] : memref<300x128xbf16, #tpu.memory_space<vmem>>, vector<300x128xbf16>
    %c0_2 = arith.constant 0 : index
    %c0_3 = arith.constant 0 : index
    %2 = vector.load %arg6[%c0_2, %c0_3] : memref<1x128xf32, #tpu.memory_space<vmem>>, vector<1x128xf32>
    %c0_4 = arith.constant 0 : index
    %c0_5 = arith.constant 0 : index
    %3 = vector.load %arg7[%c0_4, %c0_5] : memref<128x50xbf16, #tpu.memory_space<vmem>>, vector<128x50xbf16>
    %c0_6 = arith.constant 0 : index
    %c0_7 = arith.constant 0 : index
    %4 = vector.load %arg8[%c0_6, %c0_7] : memref<1x50xf32, #tpu.memory_space<vmem>>, vector<1x50xf32>
    %c0_8 = arith.constant 0 : index
    %c0_9 = arith.constant 0 : index
    %5 = vector.load %arg2[%c0_8, %c0_9] : memref<8x300xf32, #tpu.memory_space<vmem>>, vector<8x300xf32>
    %6 = arith.truncf %5 : vector<8x300xf32> to vector<8x300xbf16>
    %c0_10 = arith.constant 0 : index
    %c0_11 = arith.constant 0 : index
    %7 = vector.load %arg3[%c0_10, %c0_11] : memref<8x300xf32, #tpu.memory_space<vmem>>, vector<8x300xf32>
    %8 = arith.truncf %7 : vector<8x300xf32> to vector<8x300xbf16>
    %c0_12 = arith.constant 0 : index
    %c0_13 = arith.constant 0 : index
    %9 = vector.load %arg4[%c0_12, %c0_13] : memref<8x300xf32, #tpu.memory_space<vmem>>, vector<8x300xf32>
    %10 = arith.truncf %9 : vector<8x300xf32> to vector<8x300xbf16>
    %11 = tpu.concatenate %6, %8, %10 in 0 : vector<8x300xbf16>, vector<8x300xbf16>, vector<8x300xbf16> -> vector<24x300xbf16>
    %cst = arith.constant dense<0.000000e+00> : vector<24x128xf32>
    %12 = tpu.matmul %11, %1, %cst {dimension_numbers = #tpu.dot_dimension_numbers<[1], [0], [0], [1], [0, 0, 1, 1], [], []>} : vector<24x300xbf16>, vector<300x128xbf16>, vector<24x128xf32> -> vector<24x128xf32>
    %13 = vector.broadcast %2 : vector<1x128xf32> to vector<24x128xf32>
    %14 = arith.addf %12, %13 : vector<24x128xf32>
    %cst_14 = arith.constant 0.000000e+00 : f32
    %15 = vector.broadcast %cst_14 : f32 to vector<24x128xf32>
    %16 = arith.cmpf oge, %14, %15 : vector<24x128xf32>
    %cst_15 = arith.constant 1.000000e+00 : f32
    %17 = vector.broadcast %cst_15 : f32 to vector<24x128xf32>
    %18 = vector.broadcast %0 : f32 to vector<24x128xf32>
    %19 = arith.select %16, %17, %18 : vector<24x128xi1>, vector<24x128xf32>
    %20 = arith.mulf %14, %19 : vector<24x128xf32>
    %21 = arith.truncf %20 : vector<24x128xf32> to vector<24x128xbf16>
    %cst_16 = arith.constant dense<0.000000e+00> : vector<24x50xf32>
    %22 = tpu.matmul %21, %3, %cst_16 {dimension_numbers = #tpu.dot_dimension_numbers<[1], [0], [0], [1], [0, 0, 1, 1], [], []>} : vector<24x128xbf16>, vector<128x50xbf16>, vector<24x50xf32> -> vector<24x50xf32>
    %23 = vector.broadcast %4 : vector<1x50xf32> to vector<24x50xf32>
    %24 = arith.addf %22, %23 : vector<24x50xf32>
    %25 = vector.extract_strided_slice %24 {offsets = [0, 0], sizes = [8, 50], strides = [1, 1]} : vector<24x50xf32> to vector<8x50xf32>
    %26 = vector.extract_strided_slice %24 {offsets = [8, 0], sizes = [8, 50], strides = [1, 1]} : vector<24x50xf32> to vector<8x50xf32>
    %27 = vector.extract_strided_slice %24 {offsets = [16, 0], sizes = [8, 50], strides = [1, 1]} : vector<24x50xf32> to vector<8x50xf32>
    %28 = tpu.concatenate %25, %26 in 1 : vector<8x50xf32>, vector<8x50xf32> -> vector<8x100xf32>
    %c0_17 = arith.constant 0 : index
    %c0_18 = arith.constant 0 : index
    %29 = vector.load %arg9[%c0_17, %c0_18] : memref<8x100xf32, #tpu.memory_space<vmem>>, vector<8x100xf32>
    tpu.vector_store %arg9[%c0_17, %c0_18], %28 {strides = array<i32>} : memref<8x100xf32, #tpu.memory_space<vmem>>, vector<8x100xf32>,
    %30 = tpu.concatenate %25, %27 in 1 : vector<8x50xf32>, vector<8x50xf32> -> vector<8x100xf32>
    %c0_19 = arith.constant 0 : index
    %c0_20 = arith.constant 0 : index
    %31 = vector.load %arg10[%c0_19, %c0_20] : memref<8x100xf32, #tpu.memory_space<vmem>>, vector<8x100xf32>
    tpu.vector_store %arg10[%c0_19, %c0_20], %30 {strides = array<i32>} : memref<8x100xf32, #tpu.memory_space<vmem>>, vector<8x100xf32>,
    return
  }
  func.func @transform_0(%arg0: i32) -> i32 {
    %c0_i32 = arith.constant 0 : i32
    %c0_i32_0 = arith.constant 0 : i32
    return %c0_i32 : i32
  }
  func.func @transform_1(%arg0: i32) -> (i32, i32) {
    %c0_i32 = arith.constant 0 : i32
    %c0_i32_0 = arith.constant 0 : i32
    return %arg0, %c0_i32 : i32, i32
  }
  func.func @transform_2(%arg0: i32) -> (i32, i32) {
    %c0_i32 = arith.constant 0 : i32
    %c0_i32_0 = arith.constant 0 : i32
    return %arg0, %c0_i32 : i32, i32
  }
  func.func @transform_3(%arg0: i32) -> (i32, i32) {
    %c0_i32 = arith.constant 0 : i32
    %c0_i32_0 = arith.constant 0 : i32
    return %arg0, %c0_i32 : i32, i32
  }
  func.func @transform_4(%arg0: i32) -> (i32, i32) {
    %c0_i32 = arith.constant 0 : i32
    %c0_i32_0 = arith.constant 0 : i32
    %c0_i32_1 = arith.constant 0 : i32
    return %c0_i32, %c0_i32_0 : i32, i32
  }
  func.func @transform_5(%arg0: i32) -> (i32, i32) {
    %c0_i32 = arith.constant 0 : i32
    %c0_i32_0 = arith.constant 0 : i32
    %c0_i32_1 = arith.constant 0 : i32
    return %c0_i32, %c0_i32_0 : i32, i32
  }
  func.func @transform_6(%arg0: i32) -> (i32, i32) {
    %c0_i32 = arith.constant 0 : i32
    %c0_i32_0 = arith.constant 0 : i32
    %c0_i32_1 = arith.constant 0 : i32
    return %c0_i32, %c0_i32_0 : i32, i32
  }
  func.func @transform_7(%arg0: i32) -> (i32, i32) {
    %c0_i32 = arith.constant 0 : i32
    %c0_i32_0 = arith.constant 0 : i32
    %c0_i32_1 = arith.constant 0 : i32
    return %c0_i32, %c0_i32_0 : i32, i32
  }
  func.func @transform_8(%arg0: i32) -> (i32, i32) {
    %c0_i32 = arith.constant 0 : i32
    %c0_i32_0 = arith.constant 0 : i32
    return %arg0, %c0_i32 : i32, i32
  }
  func.func @transform_9(%arg0: i32) -> (i32, i32) {
    %c0_i32 = arith.constant 0 : i32
    %c0_i32_0 = arith.constant 0 : i32
    return %arg0, %c0_i32 : i32, i32
  }
}

</mosaic_0001>

<bundles_post_ra>
// kernel: triplet_net_v2_forward.1
= control target key start
LH: loop header
LB: loop body
LE: loop exit
PB: predicated region body
PF: predicated region fallthrough
CT: control target
= control target key end

     0   :  { %16 = vsyncpa [#allocation4], 0  ;;  %vm253_vm0 = vcmask 1045504   ;;  %vm116_vm1 = vcmask 1043456   ;;  %vm247_vm2 = vcmask 359424   ;;  %s897_s0 = inlined_call_operand.<no memory space> [shape: f32[1], index: 0, kind: input, shape index: {}]   ;;  %s898_s1 = inlined_call_operand.vmem [shape: f32[8,300], index: 1, kind: input, shape index: {}]   ;;  %s899_s2 = inlined_call_operand.vmem [shape: f32[8,300], index: 2, kind: input, shape index: {}]   ;;  %s900_s3 = inlined_call_operand.vmem [shape: f32[8,300], index: 3, kind: input, shape index: {}]   ;;  %s901_s4 = inlined_call_operand.vmem [shape: bf16[300,128], index: 4, kind: input, shape index: {}]   ;;  %s902_s5 = inlined_call_operand.vmem [shape: f32[1,128], index: 5, kind: input, shape index: {}]   ;;  %s903_s6 = inlined_call_operand.vmem [shape: bf16[128,50], index: 6, kind: input, shape index: {}]   ;;  %s904_s7 = inlined_call_operand.vmem [shape: f32[1,50], index: 7, kind: input, shape index: {}]   ;;  %s905_s8 = inlined_call_operand.hbm [shape: f32[8,100], index: 8, kind: output, shape index: {0}]   ;;  %s906_s9 = inlined_call_operand.hbm [shape: f32[8,100], index: 9, kind: output, shape index: {1}]  }
   0x1   :  { %v617_v0 = vld [vmem:[%s901_s4 + $0x40] sm:$0xff]   ;;  %v619_v2 = vld [vmem:[%s901_s4 + $0x48] sm:$0xff]   ;;  %v621_v4 = vld [vmem:[%s901_s4 + $0x50] sm:$0xff]  }
   0x2   :  { %v618_v1 = vld [vmem:[%s901_s4] sm:$0xff]   ;;  %540 = vmatprep.subr.bf16.mxu0 %v617_v0  ;;  %v620_v3 = vld [vmem:[%s901_s4 + $0x8] sm:$0xff]   ;;  %v622_v5 = vld [vmem:[%s901_s4 + $0x10] sm:$0xff]  }
   0x3   :  { %541 = vmatpush3.bf16.msra.mxu0 %v618_v1  ;;  %v623_v6 = vld [vmem:[%s901_s4 + $0x58] sm:$0xff]   ;;  %v625_v8 = vld [vmem:[%s901_s4 + $0x60] sm:$0xff]   ;;  %v627_v11 = vld [vmem:[%s901_s4 + $0x68] sm:$0xff]  }
   0x4   :  { %542 = vmatprep.subr.bf16.mxu0 %v619_v2  ;;  %v624_v7 = vld [vmem:[%s901_s4 + $0x18] sm:$0xff]   ;;  %v630_v9 = vld [vmem:[%s901_s4 + $0x80] sm:$0xff]   ;;  %v633_v12 = vld [vmem:[%s901_s4 + $0x88] sm:$0xff]  }
   0x5   :  { %v626_v10 = vld [vmem:[%s901_s4 + $0x20] sm:$0xff]   ;;  %583 = vmatprep.subr.bf16.mxu1 %v630_v9  ;;  %v628_v13 = vld [vmem:[%s901_s4 + $0x28] sm:$0xff]   ;;  %v629_v14 = vld [vmem:[%s901_s4 + $0x70] sm:$0xff]  }
   0x6   :  { %584 = vmatpush3.bf16.msra.mxu1 %v630_v9  ;;  %v93_v15 = vld [vmem:[%s898_s1 + $0x8] sm:$0xff]  ;;  %v98_v19 = vld [vmem:[%s899_s2] sm:$0xff]  ;;  %v635_v20 = vld [vmem:[%s901_s4 + $0x90] sm:$0x3f]  }
   0x7   :  { %543 = vmatpush3.bf16.msra.mxu0 %v620_v3  ;;  %585 = vmatprep.subr.bf16.mxu1 %v633_v12  ;;  %v99_v16 = vld [vmem:[%s899_s2 + $0x8] sm:$0xff]  ;;  %v96_v17 = vpack.c.bf16 %v93_v15, %v93_v15  ;;  %v94_v21 = vld [vmem:[%s898_s1 + $0x10] sm:$0xff]  ;;  %v101_v25 = vpack.c.bf16 %v98_v19, %v98_v19  ;;  %v632_v29 = vld [vmem:[%s901_s4 + $0x78] sm:$0xff]   ;;  %v255_v30 = vsel %vm253_vm0, %v635_v20, 0 }
   0x8   :  { %544 = vmatprep.subr.bf16.mxu0 %v621_v4  ;;  %v102_v18 = vpack.c.bf16 %v99_v16, %v99_v16  ;;  %v100_v22 = vld [vmem:[%s899_s2 + $0x10] sm:$0xff]  ;;  %v97_v26 = vpack.c.bf16 %v94_v21, %v94_v21  ;;  %v636_v33 = vld [vmem:[%s903_s6] sm:$0xff]   ;;  %v634_v36 = vld [vmem:[%s901_s4 + $0x38] sm:$0xff]  }
   0x9   :  { %v631_v23 = vld [vmem:[%s901_s4 + $0x30] sm:$0xff]   ;;  %v103_v27 = vpack.c.bf16 %v100_v22, %v100_v22  ;;  %v92_v34 = vld [vmem:[%s898_s1] sm:$0xff]  ;;  %v113_v37 = vrot.slane %v101_v25, 4  ;;  %v637_v39 = vld [vmem:[%s903_s6 + $0x8] sm:$0xff]  }
   0xa   :  { %586 = vmatpush3.bf16.msra.mxu1 %v633_v12  ;;  %v114_v24 = vrot.slane %v102_v18, 4  ;;  %v106_v28 = vld [vmem:[%s900_s3 + $0x10] sm:$0xff]  ;;  %v105_v40 = vld [vmem:[%s900_s3 + $0x8] sm:$0xff]  ;;  %v95_v41 = vpack.c.bf16 %v92_v34, %v92_v34 }
   0xb   :  { %545 = vmatpush3.bf16.msra.mxu0 %v622_v5  ;;  %613 = vmatprep.subr.msk.bf16.mxu1 %vm253_vm0, %v635_v20  ;;  %v115_v32 = vrot.slane %v103_v27, 4  ;;  %v109_v35 = vpack.c.bf16 %v106_v28, %v106_v28 }
   0xc   :  { %546 = vmatprep.subr.bf16.mxu0 %v623_v6  ;;  %v123_v31 = vsel %vm116_vm1, %v96_v17, %v114_v24 }
   0xd   :  { %289 = vmatprep.mubr.bf16.mxu0 %v123_v31  ;;  %v127_v38 = vsel %vm116_vm1, %v97_v26, %v115_v32 }
   0xe   :  { %588 = vmatpush3.bf16.msra.mxu1 %v255_v30  ;;  %589 = vmatprep.mubr.msk.bf16.mxu1 %vm247_vm2, %v127_v38 }
   0xf   :  { %547 = vmatpush3.bf16.msra.mxu0 %v624_v7  ;;  %593 = vmatprep.subr.bf16.mxu1 %v636_v33 }
  0x10   :  { %548 = vmatprep.subr.bf16.mxu0 %v625_v8 }
  0x11   :  { %590 = vmatmul.mubr.msk.bf16.vlgmr.msra.gmra.mrb[0].mxu1 %vm247_vm2, %v109_v35 }
  0x13   :  { %549 = vmatpush3.bf16.msra.mxu0 %v626_v10 }
  0x14   :  { %550 = vmatprep.subr.bf16.mxu0 %v627_v11 }
  0x17   :  { %551 = vmatpush3.bf16.msra.mxu0 %v628_v13 }
  0x18   :  { %552 = vmatprep.subr.bf16.mxu0 %v629_v14 }
  0x1b   :  { %553 = vmatpush3.bf16.msra.mxu0 %v631_v23 }
  0x1c   :  { %554 = vmatprep.subr.bf16.mxu0 %v632_v29 }
  0x1d   :  { %17 = vsyncpa [#allocation6], 0  ;;  %594 = vmatpush3.bf16.msra.mxu1 %v636_v33  ;;  %v638_v42 = vld [vmem:[%s903_s6 + $0x10] sm:$0xff]   ;;  %v119_v43 = vsel %vm116_vm1, %v95_v41, %v113_v37  ;;  %v108_v44 = vpack.c.bf16 %v105_v40, %v105_v40  ;;  %v104_v45 = vld [vmem:[%s900_s3] sm:$0xff]  ;;  %v356_v1 = vstv %s897_s0  ;;  %s692_s16 = smov 50   ;;  %s693_s17 = smov [#allocation3]  }
  0x1e   :  { %595 = vmatprep.subr.bf16.mxu1 %v637_v39  ;;  %v107_v46 = vpack.c.bf16 %v104_v45, %v104_v45  ;;  %v639_v47 = vld [vmem:[%s903_s6 + $0x18] sm:$0xff]   ;;  %v640_v48 = vld [vmem:[%s903_s6 + $0x20] sm:$0xff]   ;;  %v641_v49 = vld [vmem:[%s903_s6 + $0x28] sm:$0xff]   ;;  %s487_s18 = sshll.u32 %s693_s17, 4  ;;  %vm471_vm6 = vcmask 408576   ;;  %vm473_vm7 = vcmask 818176   ;;  %s488_s18 = int_to_ptr.vmem [resolvable:$true] %s487_s18 }
  0x1f   :  { %555 = vmatpush3.bf16.msra.mxu0 %v634_v36  ;;  %v642_v50 = vld [vmem:[%s903_s6 + $0x30] sm:$0xff]   ;;  %v643_v51 = vld [vmem:[%s903_s6 + $0x38] sm:$0xff]   ;;  %v509_v58 = vld [vmem:[%s902_s5] ss:$0 sm:$0xff]  ;;  %s694_s19 = smov [#allocation5]   ;;  %s644_s20 = scalar_lea.vmem %s488_s18, 128 }
  0x20   :  { %v531_v19 = vld [vmem:[%s904_s7] ss:$0 sm:$0xff]  ;;  %s497_s7 = sshll.u32 %s694_s19, 4  ;;  %p645_p0 = scmp.ne.s32.totalorder %s488_s18, %s644_s20  ;;  %s498_s7 = int_to_ptr.vmem [resolvable:$true] %s497_s7 }
  0x21   :  { %596 = vmatpush3.bf16.msra.mxu1 %v637_v39  ;;  %p649_p1 = scmp.lt.s32.totalorder %s488_s18, %s488_s18  ;;  %p650_p2 = scmp.lt.s32.totalorder %s644_s20, %s644_s20 }
  0x22   :  { %290 = vmatmul.mubr.bf16.vlgmr.msra.gmra.mrb[0].mxu0 %v119_v43  ;;  %597 = vmatprep.subr.bf16.mxu1 %v638_v42 }
  0x23   :  { %297 = vmatprep.mubr.bf16.mxu0 %v108_v44  ;;  %p651_p3 = por %p650_p2, %p649_p1 }
  0x25   :  { %598 = vmatpush3.bf16.msra.mxu1 %v638_v42  ;;  %p652_p4 = pnand %p651_p3, %p645_p0 }
  0x26   :  { %599 = vmatprep.subr.bf16.mxu1 %v639_v47 }
  0x29   :  { %600 = vmatpush3.bf16.msra.mxu1 %v639_v47 }
  0x2a   :  { %298 = vmatmul.mubr.bf16.gmra.mrb[4].mxu0 %v107_v46  ;;  %601 = vmatprep.subr.bf16.mxu1 %v640_v48 }
  0x2d   :  { %602 = vmatpush3.bf16.msra.mxu1 %v640_v48 }
  0x2e   :  { %603 = vmatprep.subr.bf16.mxu1 %v641_v49 }
  0x31   :  { %604 = vmatpush3.bf16.msra.mxu1 %v641_v49 }
  0x32   :  { %605 = vmatprep.subr.bf16.mxu1 %v642_v50 }
  0x35   :  { %606 = vmatpush3.bf16.msra.mxu1 %v642_v50 }
  0x36   :  { %607 = vmatprep.subr.bf16.mxu1 %v643_v51 }
  0x39   :  { %608 = vmatpush3.bf16.msra.mxu1 %v643_v51 }
  0xe4   :  { %v591_v52 = vpop.f32.mrb[0].mxu1 }
  0xe5   :  { %v339_v53 = vpop.f32.mrb[1].mxu1 }
  0xe6   :  { %v592_v54 = vpop.f32.mrb[2].mxu1 }
  0xe7   :  { %v342_v55 = vpop.f32.mrb[3].mxu1 }
  0xf5   :  { %v556_v56 = vpop.f32.mrb[0].mxu0 }
  0xf6   :  { %v557_v57 = vpop.f32.mrb[1].mxu0 }
  0xf7   :  { %v558_v59 = vadd.f32 %v557_v57, %v556_v56  ;;  %v559_v60 = vpop.f32.mrb[2].mxu0 }
  0xf8   :  { %v560_v61 = vpop.f32.mrb[3].mxu0 }
  0xf9   :  { %v561_v62 = vadd.f32 %v560_v61, %v559_v60  ;;  %v292_v63 = vadd.f32 %v558_v59, %v509_v58 }
  0xfb   :  { %v340_v0 = vadd.f32 %v339_v53, %v292_v63  ;;  %v295_v2 = vadd.f32 %v561_v62, %v509_v58 }
  0xfd   :  { %vm353_vm3 = vcmp.ge.f32.partialorder %v340_v0, 0.0  ;;  %v343_v3 = vadd.f32 %v342_v55, %v295_v2  ;;  %v562_v4 = vpop.f32.mrb[4].mxu0 }
  0xfe   :  { %v357_v5 = vsel %vm353_vm3, 1.0, %v356_v1  ;;  %v563_v6 = vpop.f32.mrb[5].mxu0 }
  0xff   :  { %vm354_vm4 = vcmp.ge.f32.partialorder %v343_v3, 0.0  ;;  %v564_v7 = vadd.f32 %v563_v6, %v562_v4  ;;  %v565_v8 = vpop.f32.mrb[6].mxu0  ;;  %v360_v11 = vmul.f32 %v357_v5, %v340_v0 }
 0x100   :  { %v358_v9 = vsel %vm354_vm4, 1.0, %v356_v1  ;;  %v566_v10 = vpop.f32.mrb[7].mxu0 }
 0x101   :  { %v361_v12 = vmul.f32 %v358_v9, %v343_v3  ;;  %v300_v13 = vadd.f32 %v564_v7, %v509_v58 }
 0x103   :  { %v348_v14 = vadd.f32 %v591_v52, %v300_v13  ;;  %v363_v15 = vpack.c.bf16 %v361_v12, %v360_v11 }
 0x105   :  { %vm355_vm5 = vcmp.ge.f32.partialorder %v348_v14, 0.0  ;;  %609 = vmatprep.mubr.bf16.mxu1 %v363_v15 }
 0x106   :  { %v359_v16 = vsel %vm355_vm5, 1.0, %v356_v1 }
 0x107   :  { %v362_v17 = vmul.f32 %v359_v16, %v348_v14 }
 0x109   :  { %v364_v18 = vpack.c.bf16 %v362_v17, %v362_v17 }
 0x10b   :  { %610 = vmatmul.mubr.bf16.vlgmr.msra.gmra.mrb[4].mxu1 %v364_v18 }
 0x1de   :  { %v611_v20 = vpop.f32.mrb[4].mxu1 }
 0x1df   :  { %v453_v21 = vpop.f32.mrb[5].mxu1  ;;  %v462_v26 = vadd.f32 %v611_v20, %v531_v19 }
 0x1e0   :  { %v454_v22 = vadd.f32 %v531_v19, %v453_v21  ;;  %v612_v23 = vpop.f32.mrb[6].mxu1 }
 0x1e1   :  { %v456_v24 = vpop.f32.mrb[7].mxu1 }
 0x1e2   :  { %v457_v25 = vadd.f32 %v531_v19, %v456_v24 }
 0x1e4   :  { %468 = vrot.lane.b32.xlu0 %v457_v25, %s692_s16 }
 0x1e8   :  { %476 = vrot.lane.b32.xlu0 %v462_v26, %s692_s16 }
 0x256   :  { %v469_v27 = vpop.permute.xlu0 %468 }
 0x257   :  { %v472_v28 = vsel %vm471_vm6, %v454_v22, %v469_v27 }
 0x258   :  { %474 = vst.msk [vmem:[#allocation3] sm:$0xff] %vm473_vm7, %v472_v28 }
 0x259   :  { %655 = shalt.err (!%p652_p4)
}
 0x25a   :  { %s656_s23 = scalar_lea.hbm %s905_s8, 128 }
 0x25b   :  { %p657_p5 = scmp.ne.s32.totalorder %s905_s8, %s656_s23  ;;  %p660_p6 = scmp.lt.u32.totalorder %s656_s23, %s905_s8 }
 0x25d   :  { %p662_p7 = pnand %p660_p6, %p657_p5 }
 0x25f   :  { %665 = shalt.err (!%p662_p7)
}
 0x260   :  { %490 = dma.vmem_to_hbm [thread:$0]  %s488_s18, 128, %s905_s8, [#allocation4]   ;;  %v477_v29 = vpop.permute.xlu0 %476 }
 0x261   :  { %v479_v30 = vsel %vm471_vm6, %v454_v22, %v477_v29  ;;  %s666_s28 = scalar_lea.vmem %s498_s7, 128  ;;  %p671_p9 = scmp.lt.s32.totalorder %s498_s7, %s498_s7 }
 0x262   :  { %480 = vst.msk [vmem:[#allocation5] sm:$0xff] %vm473_vm7, %v479_v30  ;;  %p667_p8 = scmp.ne.s32.totalorder %s498_s7, %s666_s28  ;;  %p672_p10 = scmp.lt.s32.totalorder %s666_s28, %s666_s28 }
 0x264   :  { %p673_p11 = por %p672_p10, %p671_p9 }
 0x266   :  { %p674_p12 = pnand %p673_p11, %p667_p8 }
 0x268   :  { %677 = shalt.err (!%p674_p12)
}
 0x269   :  { %s678_s10 = scalar_lea.hbm %s906_s9, 128 }
 0x26a   :  { %p679_p13 = scmp.ne.s32.totalorder %s906_s9, %s678_s10  ;;  %p682_p0 = scmp.lt.u32.totalorder %s678_s10, %s906_s9 }
 0x26c   :  { %p684_p1 = pnand %p682_p0, %p679_p13 }
 0x26e   :  { %687 = shalt.err (!%p684_p1)
}
 0x26f   :  { %500 = dma.vmem_to_hbm [thread:$0]  %s498_s7, 128, %s906_s9, [#allocation6]  }
 0x270   :  { %688 = dma.done.wait [#allocation4], 128  }
 0x271   :  { %689 = vsyncadd [#allocation4], 4294967168 }
 0x272   :  { %690 = dma.done.wait [#allocation6], 128  }
 0x273   :  { %691 = vsyncadd [#allocation6], 4294967168 }
 0x274   :  { %507 = vsyncpa [#allocation4], 1 }
 0x275   :  { %508 = vsyncpa [#allocation6], 1 }

</bundles_post_ra>
